<compile_context>
chip_gen: v7x
topology: tpu7x:2x2x1
jax: 0.10.0
libtpu: 0.0.40
codegen_flags: <defaults>
</compile_context>

<pallas_src>
import math

import numpy as np
import jax
import jax.numpy as jnp
from jax.experimental import pallas as pl
from jax.experimental.pallas import tpu as pltpu

NUM_CLASSES = 5
DICE_SMOOTH = 1.0  # TODO(synk): DiceLoss class was not provided in the source;
#                    implementing the standard global soft-Dice (softmax vs
#                    one-hot, smooth=1) commonly paired with this loss.


# ----------------------------- Pallas kernel --------------------------------
def _make_kernel(C: int, W: int):
    w_is_pow2 = (W & (W - 1)) == 0

    def kernel(w_ref, x_ref, t_ref, out_ref):
        # w_ref  : SMEM (C,)  f32 class weights
        # x_ref  : VMEM (C, H, L) logits block (lane-folded batch, L = bt*W)
        # t_ref  : VMEM (H, L)    int32 labels block
        # out_ref: VMEM (4, H, L) f32 per-shard accumulator (resident along axis b)
        b = pl.program_id(1)

        @pl.when(b == 0)
        def _init():
            out_ref[...] = jnp.zeros_like(out_ref)

        x = x_ref[...].astype(jnp.float32)            # (C, H, L)
        t = t_ref[...]                                # (H, L)
        H, L = t.shape

        # --- Sobel boundary map of the label image (zero padding), shift-based ---
        tf = t.astype(jnp.float32)
        row = jax.lax.broadcasted_iota(jnp.int32, (H, L), 0)
        lane = jax.lax.broadcasted_iota(jnp.int32, (H, L), 1)
        col = (lane & (W - 1)) if w_is_pow2 else (lane % W)   # column within image
        up_ok = (row > 0).astype(jnp.float32)
        dn_ok = (row < H - 1).astype(jnp.float32)
        lt_ok = (col > 0).astype(jnp.float32)
        rt_ok = (col < W - 1).astype(jnp.float32)

        def dn(z):   # z[i+1, j], zero at i == H-1       (roll by H-1 == -1 mod H)
            return dn_ok * pltpu.roll(z, H - 1, axis=0)

        def up(z):   # z[i-1, j], zero at i == 0
            return up_ok * pltpu.roll(z, 1, axis=0)

        def rt(z):   # z[i, j+1], zero at image right border (col % W == W-1)
            return rt_ok * pltpu.roll(z, L - 1, axis=1)

        def lt(z):   # z[i, j-1], zero at image left border  (col % W == 0)
            return lt_ok * pltpu.roll(z, 1, axis=1)

        sv = up(tf) + 2.0 * tf + dn(tf)     # [1,2,1] vertical smooth
        gx = rt(sv) - lt(sv)                # [-1,0,1] horizontal diff
        sh = lt(tf) + 2.0 * tf + rt(tf)     # [1,2,1] horizontal smooth
        gy = dn(sh) - up(sh)                # [-1,0,1] vertical diff
        edges = jnp.sqrt(gx * gx + gy * gy)

        # --- one pass over classes: softmax denom + selected stats + boundary L1 ---
        m = jnp.max(x, axis=0)                         # (H, L)
        s = jnp.zeros((H, L), jnp.float32)             # softmax denominator
        ce_den = jnp.zeros((H, L), jnp.float32)        # w[t]
        wx = jnp.zeros((H, L), jnp.float32)            # w[t] * x[t]
        x_sel = jnp.zeros((H, L), jnp.float32)         # x[t]
        bnd = jnp.zeros((H, L), jnp.float32)           # sum_c |x_c - edges|
        for c in range(C):
            xc = x[c]
            s = s + jnp.exp(xc - m)
            oh = (t == c).astype(jnp.float32)
            wo = w_ref[c] * oh
            ce_den = ce_den + wo
            wx = wx + wo * xc
            x_sel = x_sel + oh * xc
            bnd = bnd + jnp.abs(xc - edges)
        lse = m + jnp.log(s)                           # log-sum-exp
        ce_num = ce_den * lse - wx                     # w[t] * (-log softmax[t])
        inter = jnp.exp(x_sel - lse)                   # softmax[t]

        out_ref[0, :, :] += ce_num
        out_ref[1, :, :] += ce_den
        out_ref[2, :, :] += inter
        out_ref[3, :, :] += bnd

    return kernel


# ------------------------------ tiling plan ----------------------------------
def _vmem_capacity_bytes():
    try:
        return int(pltpu.get_tpu_info().vmem_capacity_bytes)
    except Exception:
        return 64 * 1024 * 1024   # conservative (v7x per-TC VMEM)


def _plan_tiles(N, C, H, W, itemsize):
    """Return (bt, n_shards, nb, n_pad, vmem_cap): images per block, shard count,
    blocks per shard, padded batch size."""
    vmem_cap = _vmem_capacity_bytes()
    budget = vmem_cap // 2
    # per-image working set: double-buffered input blocks, resident f32 output
    # accumulator (x2), f32 copy of the logits, ~14 (H,W)-sized f32/i32 maps.
    per_image = (2 * (C * H * W * itemsize + H * W * 4)
                 + 2 * 4 * H * W * 4
                 + C * H * W * 4
                 + 14 * H * W * 4)
    lane_q = 128 // math.gcd(W, 128)        # images per 128-lane-aligned block
    bt_vmem = max(1, budget // per_image)
    bt = max(lane_q, (bt_vmem // lane_q) * lane_q)
    blocks = -(-N // bt)                    # ceil
    if blocks <= 1:
        bt = lane_q * (-(-N // lane_q))     # minimal lane-dense cover of the batch
        n_shards, nb = 1, 1
    else:
        n_shards = 2                        # v7x: one shard per TensorCore
        nb = -(-blocks // n_shards)
    n_pad = n_shards * nb * bt
    return bt, n_shards, nb, n_pad, vmem_cap


# ------------------------------ host wrapper ---------------------------------
def combined_custom_loss(inputs, targets, class_weights,
                         dice_weight=1.0, boundary_weight=1.0, l1_weight=1.0):
    """inputs: (N, C, H, W) logits (any float dtype); targets: (N, H, W) int labels."""
    N, C, H, W = inputs.shape
    assert C == NUM_CLASSES
    targets = targets.astype(jnp.int32)
    w32 = jnp.asarray(class_weights, jnp.float32)

    bt, n_shards, nb, n_pad, vmem_cap = _plan_tiles(N, C, H, W, inputs.dtype.itemsize)
    LB = bt * W

    # Lane-dense layout: fold the (padded) batch into the last dim.
    x_r = jnp.transpose(inputs, (1, 2, 0, 3))        # (C, H, N, W)
    t_r = jnp.transpose(targets, (1, 0, 2))          # (H, N, W)
    if n_pad != N:
        # zero logits / class-0 labels; contributions removed analytically below
        x_r = jnp.pad(x_r, ((0, 0), (0, 0), (0, n_pad - N), (0, 0)))
        t_r = jnp.pad(t_r, ((0, 0), (0, n_pad - N), (0, 0)))
    x_r = x_r.reshape(C, H, n_pad * W)
    t_r = t_r.reshape(H, n_pad * W)

    kernel = _make_kernel(C, W)
    acc = pl.pallas_call(
        kernel,
        out_shape=jax.ShapeDtypeStruct((n_shards, 4, H, LB), jnp.float32),
        grid_spec=pltpu.PrefetchScalarGridSpec(
            num_scalar_prefetch=0,
            grid=(n_shards, nb),
            in_specs=[
                pl.BlockSpec(memory_space=pltpu.MemorySpace.SMEM),            # weights
                pl.BlockSpec((C, H, LB), lambda s, b: (0, 0, s * nb + b)),    # logits
                pl.BlockSpec((H, LB), lambda s, b: (0, s * nb + b)),          # labels
            ],
            out_specs=pl.BlockSpec((None, 4, H, LB), lambda s, b: (s, 0, 0, 0)),
        ),
        compiler_params=pltpu.CompilerParams(
            dimension_semantics=("parallel", "arbitrary"),
            vmem_limit_bytes=int(min(vmem_cap * 3 // 4, 100 * 1024 * 1024)),
        ),
    )(w32, x_r, t_r)

    stats = jnp.sum(acc, axis=(0, 2, 3))             # (4,) f32
    ce_num, ce_den, inter, bnd_sum = stats[0], stats[1], stats[2], stats[3]

    # Remove contributions of zero-padded images (logits=0, label=0): each padded
    # pixel adds w0*log(C) to ce_num, w0 to ce_den, 1/C to inter and 0 to bnd.
    n_pad_pix = (n_pad - N) * H * W
    if n_pad_pix:
        ce_num = ce_num - jnp.float32(n_pad_pix) * w32[0] * jnp.float32(math.log(C))
        ce_den = ce_den - jnp.float32(n_pad_pix) * w32[0]
        inter = inter - jnp.float32(n_pad_pix) / jnp.float32(C)

    t_sum = jnp.float32(N * H * W)                   # sum of one-hot targets (exact)
    p_sum = jnp.float32(N * H * W)                   # softmax sums to 1 per pixel
    denom = jnp.float32(N * C * H * W)

    ce = ce_num / ce_den                                              # weighted CE mean
    dice = 1.0 - (2.0 * inter + DICE_SMOOTH) / (p_sum + t_sum + DICE_SMOOTH)
    l1 = (t_sum + p_sum - 2.0 * inter) / denom                        # mean |softmax - one_hot|
    boundary = bnd_sum / denom                                        # mean |logits - edges|
    return ce + dice_weight * dice + l1_weight * l1 + boundary_weight * boundary


# ---------------------------- pure-JAX reference -----------------------------
def _reference_loss(x, t, w, dice_weight=1.0, boundary_weight=1.0, l1_weight=1.0):
    N, C, H, W = x.shape
    logp = jax.nn.log_softmax(x, axis=1)
    p = jnp.exp(logp)
    oh = jax.nn.one_hot(t, C, dtype=jnp.float32).transpose(0, 3, 1, 2)
    wmap = w[t]
    nll = -jnp.take_along_axis(logp, t[:, None, :, :], axis=1)[:, 0]
    ce = jnp.sum(wmap * nll) / jnp.sum(wmap)
    inter = jnp.sum(p * oh)
    dice = 1.0 - (2.0 * inter + DICE_SMOOTH) / (jnp.sum(p) + jnp.sum(oh) + DICE_SMOOTH)
    l1 = jnp.mean(jnp.abs(p - oh))
    tf = t.astype(jnp.float32)[:, None]
    kx = jnp.array([[-1, 0, 1], [-2, 0, 2], [-1, 0, 1]], jnp.float32)[None, None]
    ky = jnp.array([[-1, -2, -1], [0, 0, 0], [1, 2, 1]], jnp.float32)[None, None]
    gx = jax.lax.conv_general_dilated(tf, kx, (1, 1), "SAME")
    gy = jax.lax.conv_general_dilated(tf, ky, (1, 1), "SAME")
    edges = jnp.sqrt(gx ** 2 + gy ** 2)
    boundary = jnp.mean(jnp.abs(x - edges))
    return ce + dice_weight * dice + l1_weight * l1 + boundary_weight * boundary


if __name__ == "__main__":
    key = jax.random.PRNGKey(0)
    k1, k2 = jax.random.split(key)
    N, C, H, W = 2, NUM_CLASSES, 16, 16
    inputs = jax.random.normal(k1, (N, C, H, W), dtype=jnp.float32)
    targets = jax.random.randint(k2, (N, H, W), 0, C, dtype=jnp.int32)
    class_weights = jnp.array([1.0, 2.0, 0.5, 1.5, 1.0], dtype=jnp.float32)

    loss = combined_custom_loss(inputs, targets, class_weights)
    loss = jax.block_until_ready(loss)

    ref = _reference_loss(inputs, targets, class_weights)
    assert jnp.allclose(loss, ref, rtol=1e-3, atol=1e-3), (float(loss), float(ref))
    print("KERNEL_OK")
</pallas_src>

<mosaic_0001>
module attributes {stable_mosaic.version = 11 : i64} {
  func.func @kernel(%arg0: i32, %arg1: i32, %arg2: memref<5xf32, #tpu.memory_space<smem>>, %arg3: memref<5x16x128xf32, #tpu.memory_space<vmem>>, %arg4: memref<16x128xi32, #tpu.memory_space<vmem>>, %arg5: memref<1x4x16x128xf32, #tpu.memory_space<vmem>>) attributes {dimension_semantics = [#tpu.dimension_semantics<parallel>, #tpu.dimension_semantics<arbitrary>], iteration_bounds = array<i64: 1, 1>, scalar_prefetch = 0 : i64, scratch_operands = 0 : i64, tpu.core_type = #tpu.core_type<tc>, window_params = [{transform_indices = @transform_0, window_bounds = array<i64: 5>}, {transform_indices = @transform_1, window_bounds = array<i64: 5, 16, 128>}, {transform_indices = @transform_2, window_bounds = array<i64: 16, 128>}, {transform_indices = @transform_3, window_bounds = array<i64: 1, 4, 16, 128>}]} {
    %c0_i32 = arith.constant 0 : i32
    %0 = arith.cmpi eq, %arg1, %c0_i32 : i32
    %1 = arith.extui %0 : i1 to i32
    %c0_i32_0 = arith.constant 0 : i32
    %2 = arith.cmpi ne, %1, %c0_i32_0 : i32
    scf.if %2 {
      %cst_57 = arith.constant 0.000000e+00 : f32
      %192 = vector.broadcast %cst_57 : f32 to vector<4x16x128xf32>
      %c0_58 = arith.constant 0 : index
      %c0_59 = arith.constant 0 : index
      %c0_60 = arith.constant 0 : index
      %c0_61 = arith.constant 0 : index
      %193 = vector.load %arg5[%c0_58, %c0_59, %c0_60, %c0_61] : memref<1x4x16x128xf32, #tpu.memory_space<vmem>>, vector<1x4x16x128xf32>
      %194 = vector.shape_cast %193 : vector<1x4x16x128xf32> to vector<4x16x128xf32>
      %195 = vector.shape_cast %192 : vector<4x16x128xf32> to vector<1x4x16x128xf32>
      tpu.vector_store %arg5[%c0_58, %c0_59, %c0_60, %c0_61], %195 {strides = array<i32>} : memref<1x4x16x128xf32, #tpu.memory_space<vmem>>, vector<1x4x16x128xf32>,
    } else {
    }
    %c0 = arith.constant 0 : index
    %c0_1 = arith.constant 0 : index
    %c0_2 = arith.constant 0 : index
    %3 = vector.load %arg3[%c0, %c0_1, %c0_2] : memref<5x16x128xf32, #tpu.memory_space<vmem>>, vector<5x16x128xf32>
    %c0_3 = arith.constant 0 : index
    %c0_4 = arith.constant 0 : index
    %4 = vector.load %arg4[%c0_3, %c0_4] : memref<16x128xi32, #tpu.memory_space<vmem>>, vector<16x128xi32>
    %5 = arith.sitofp %4 : vector<16x128xi32> to vector<16x128xf32>
    %6 = tpu.iota {dimensions = array<i32: 0>} : vector<16x128xi32>
    %7 = tpu.iota {dimensions = array<i32: 1>} : vector<16x128xi32>
    %c15_i32 = arith.constant 15 : i32
    %8 = vector.broadcast %c15_i32 : i32 to vector<16x128xi32>
    %9 = arith.andi %7, %8 : vector<16x128xi32>
    %c0_i32_5 = arith.constant 0 : i32
    %10 = vector.broadcast %c0_i32_5 : i32 to vector<16x128xi32>
    %11 = arith.cmpi sgt, %6, %10 : vector<16x128xi32>
    %12 = arith.extui %11 : vector<16x128xi1> to vector<16x128xi32>
    %13 = arith.sitofp %12 : vector<16x128xi32> to vector<16x128xf32>
    %c15_i32_6 = arith.constant 15 : i32
    %14 = vector.broadcast %c15_i32_6 : i32 to vector<16x128xi32>
    %15 = arith.cmpi slt, %6, %14 : vector<16x128xi32>
    %16 = arith.extui %15 : vector<16x128xi1> to vector<16x128xi32>
    %17 = arith.sitofp %16 : vector<16x128xi32> to vector<16x128xf32>
    %c0_i32_7 = arith.constant 0 : i32
    %18 = vector.broadcast %c0_i32_7 : i32 to vector<16x128xi32>
    %19 = arith.cmpi sgt, %9, %18 : vector<16x128xi32>
    %20 = arith.extui %19 : vector<16x128xi1> to vector<16x128xi32>
    %21 = arith.sitofp %20 : vector<16x128xi32> to vector<16x128xf32>
    %c15_i32_8 = arith.constant 15 : i32
    %22 = vector.broadcast %c15_i32_8 : i32 to vector<16x128xi32>
    %23 = arith.cmpi slt, %9, %22 : vector<16x128xi32>
    %24 = arith.extui %23 : vector<16x128xi1> to vector<16x128xi32>
    %25 = arith.sitofp %24 : vector<16x128xi32> to vector<16x128xf32>
    %c1_i32 = arith.constant 1 : i32
    %26 = tpu.dynamic_rotate %5 by %c1_i32 dim 0 : vector<16x128xf32>, i32 -> vector<16x128xf32>
    %27 = arith.mulf %13, %26 : vector<16x128xf32>
    %cst = arith.constant 2.000000e+00 : f32
    %28 = vector.broadcast %cst : f32 to vector<16x128xf32>
    %29 = arith.mulf %28, %5 : vector<16x128xf32>
    %30 = arith.addf %27, %29 : vector<16x128xf32>
    %c15_i32_9 = arith.constant 15 : i32
    %31 = tpu.dynamic_rotate %5 by %c15_i32_9 dim 0 : vector<16x128xf32>, i32 -> vector<16x128xf32>
    %32 = arith.mulf %17, %31 : vector<16x128xf32>
    %33 = arith.addf %30, %32 : vector<16x128xf32>
    %c127_i32 = arith.constant 127 : i32
    %34 = tpu.dynamic_rotate %33 by %c127_i32 dim 1 : vector<16x128xf32>, i32 -> vector<16x128xf32>
    %35 = arith.mulf %25, %34 : vector<16x128xf32>
    %c1_i32_10 = arith.constant 1 : i32
    %36 = tpu.dynamic_rotate %33 by %c1_i32_10 dim 1 : vector<16x128xf32>, i32 -> vector<16x128xf32>
    %37 = arith.mulf %21, %36 : vector<16x128xf32>
    %38 = arith.subf %35, %37 : vector<16x128xf32>
    %c1_i32_11 = arith.constant 1 : i32
    %39 = tpu.dynamic_rotate %5 by %c1_i32_11 dim 1 : vector<16x128xf32>, i32 -> vector<16x128xf32>
    %40 = arith.mulf %21, %39 : vector<16x128xf32>
    %cst_12 = arith.constant 2.000000e+00 : f32
    %41 = vector.broadcast %cst_12 : f32 to vector<16x128xf32>
    %42 = arith.mulf %41, %5 : vector<16x128xf32>
    %43 = arith.addf %40, %42 : vector<16x128xf32>
    %c127_i32_13 = arith.constant 127 : i32
    %44 = tpu.dynamic_rotate %5 by %c127_i32_13 dim 1 : vector<16x128xf32>, i32 -> vector<16x128xf32>
    %45 = arith.mulf %25, %44 : vector<16x128xf32>
    %46 = arith.addf %43, %45 : vector<16x128xf32>
    %c15_i32_14 = arith.constant 15 : i32
    %47 = tpu.dynamic_rotate %46 by %c15_i32_14 dim 0 : vector<16x128xf32>, i32 -> vector<16x128xf32>
    %48 = arith.mulf %17, %47 : vector<16x128xf32>
    %c1_i32_15 = arith.constant 1 : i32
    %49 = tpu.dynamic_rotate %46 by %c1_i32_15 dim 0 : vector<16x128xf32>, i32 -> vector<16x128xf32>
    %50 = arith.mulf %13, %49 : vector<16x128xf32>
    %51 = arith.subf %48, %50 : vector<16x128xf32>
    %52 = arith.mulf %38, %38 : vector<16x128xf32>
    %53 = arith.mulf %51, %51 : vector<16x128xf32>
    %54 = arith.addf %52, %53 : vector<16x128xf32>
    %55 = math.sqrt %54 : vector<16x128xf32>
    %cst_16 = arith.constant dense<0xFF800000> : vector<16x128xf32>
    %56 = vector.multi_reduction <maximumf>, %3, %cst_16 [0] : vector<5x16x128xf32> to vector<16x128xf32>
    %cst_17 = arith.constant 0.000000e+00 : f32
    %57 = vector.broadcast %cst_17 : f32 to vector<16x128xf32>
    %cst_18 = arith.constant 0.000000e+00 : f32
    %58 = vector.broadcast %cst_18 : f32 to vector<16x128xf32>
    %cst_19 = arith.constant 0.000000e+00 : f32
    %59 = vector.broadcast %cst_19 : f32 to vector<16x128xf32>
    %cst_20 = arith.constant 0.000000e+00 : f32
    %60 = vector.broadcast %cst_20 : f32 to vector<16x128xf32>
    %cst_21 = arith.constant 0.000000e+00 : f32
    %61 = vector.broadcast %cst_21 : f32 to vector<16x128xf32>
    %62 = vector.extract_strided_slice %3 {offsets = [0, 0, 0], sizes = [1, 16, 128], strides = [1, 1, 1]} : vector<5x16x128xf32> to vector<1x16x128xf32>
    %63 = vector.shape_cast %62 : vector<1x16x128xf32> to vector<16x128xf32>
    %64 = arith.subf %63, %56 : vector<16x128xf32>
    %65 = math.exp %64 : vector<16x128xf32>
    %66 = arith.addf %57, %65 : vector<16x128xf32>
    %c0_i32_22 = arith.constant 0 : i32
    %67 = vector.broadcast %c0_i32_22 : i32 to vector<16x128xi32>
    %68 = arith.cmpi eq, %4, %67 : vector<16x128xi32>
    %69 = arith.extui %68 : vector<16x128xi1> to vector<16x128xi32>
    %70 = arith.sitofp %69 : vector<16x128xi32> to vector<16x128xf32>
    %c0_23 = arith.constant 0 : index
    %71 = memref.load %arg2[%c0_23] : memref<5xf32, #tpu.memory_space<smem>>
    %72 = vector.broadcast %71 : f32 to vector<16x128xf32>
    %73 = arith.mulf %72, %70 : vector<16x128xf32>
    %74 = arith.addf %58, %73 : vector<16x128xf32>
    %75 = arith.mulf %73, %63 : vector<16x128xf32>
    %76 = arith.addf %59, %75 : vector<16x128xf32>
    %77 = arith.mulf %70, %63 : vector<16x128xf32>
    %78 = arith.addf %60, %77 : vector<16x128xf32>
    %79 = arith.subf %63, %55 : vector<16x128xf32>
    %80 = math.absf %79 : vector<16x128xf32>
    %81 = arith.addf %61, %80 : vector<16x128xf32>
    %82 = vector.extract_strided_slice %3 {offsets = [1, 0, 0], sizes = [1, 16, 128], strides = [1, 1, 1]} : vector<5x16x128xf32> to vector<1x16x128xf32>
    %83 = vector.shape_cast %82 : vector<1x16x128xf32> to vector<16x128xf32>
    %84 = arith.subf %83, %56 : vector<16x128xf32>
    %85 = math.exp %84 : vector<16x128xf32>
    %86 = arith.addf %66, %85 : vector<16x128xf32>
    %c1_i32_24 = arith.constant 1 : i32
    %87 = vector.broadcast %c1_i32_24 : i32 to vector<16x128xi32>
    %88 = arith.cmpi eq, %4, %87 : vector<16x128xi32>
    %89 = arith.extui %88 : vector<16x128xi1> to vector<16x128xi32>
    %90 = arith.sitofp %89 : vector<16x128xi32> to vector<16x128xf32>
    %c1 = arith.constant 1 : index
    %91 = memref.load %arg2[%c1] : memref<5xf32, #tpu.memory_space<smem>>
    %92 = vector.broadcast %91 : f32 to vector<16x128xf32>
    %93 = arith.mulf %92, %90 : vector<16x128xf32>
    %94 = arith.addf %74, %93 : vector<16x128xf32>
    %95 = arith.mulf %93, %83 : vector<16x128xf32>
    %96 = arith.addf %76, %95 : vector<16x128xf32>
    %97 = arith.mulf %90, %83 : vector<16x128xf32>
    %98 = arith.addf %78, %97 : vector<16x128xf32>
    %99 = arith.subf %83, %55 : vector<16x128xf32>
    %100 = math.absf %99 : vector<16x128xf32>
    %101 = arith.addf %81, %100 : vector<16x128xf32>
    %102 = vector.extract_strided_slice %3 {offsets = [2, 0, 0], sizes = [1, 16, 128], strides = [1, 1, 1]} : vector<5x16x128xf32> to vector<1x16x128xf32>
    %103 = vector.shape_cast %102 : vector<1x16x128xf32> to vector<16x128xf32>
    %104 = arith.subf %103, %56 : vector<16x128xf32>
    %105 = math.exp %104 : vector<16x128xf32>
    %106 = arith.addf %86, %105 : vector<16x128xf32>
    %c2_i32 = arith.constant 2 : i32
    %107 = vector.broadcast %c2_i32 : i32 to vector<16x128xi32>
    %108 = arith.cmpi eq, %4, %107 : vector<16x128xi32>
    %109 = arith.extui %108 : vector<16x128xi1> to vector<16x128xi32>
    %110 = arith.sitofp %109 : vector<16x128xi32> to vector<16x128xf32>
    %c2 = arith.constant 2 : index
    %111 = memref.load %arg2[%c2] : memref<5xf32, #tpu.memory_space<smem>>
    %112 = vector.broadcast %111 : f32 to vector<16x128xf32>
    %113 = arith.mulf %112, %110 : vector<16x128xf32>
    %114 = arith.addf %94, %113 : vector<16x128xf32>
    %115 = arith.mulf %113, %103 : vector<16x128xf32>
    %116 = arith.addf %96, %115 : vector<16x128xf32>
    %117 = arith.mulf %110, %103 : vector<16x128xf32>
    %118 = arith.addf %98, %117 : vector<16x128xf32>
    %119 = arith.subf %103, %55 : vector<16x128xf32>
    %120 = math.absf %119 : vector<16x128xf32>
    %121 = arith.addf %101, %120 : vector<16x128xf32>
    %122 = vector.extract_strided_slice %3 {offsets = [3, 0, 0], sizes = [1, 16, 128], strides = [1, 1, 1]} : vector<5x16x128xf32> to vector<1x16x128xf32>
    %123 = vector.shape_cast %122 : vector<1x16x128xf32> to vector<16x128xf32>
    %124 = arith.subf %123, %56 : vector<16x128xf32>
    %125 = math.exp %124 : vector<16x128xf32>
    %126 = arith.addf %106, %125 : vector<16x128xf32>
    %c3_i32 = arith.constant 3 : i32
    %127 = vector.broadcast %c3_i32 : i32 to vector<16x128xi32>
    %128 = arith.cmpi eq, %4, %127 : vector<16x128xi32>
    %129 = arith.extui %128 : vector<16x128xi1> to vector<16x128xi32>
    %130 = arith.sitofp %129 : vector<16x128xi32> to vector<16x128xf32>
    %c3 = arith.constant 3 : index
    %131 = memref.load %arg2[%c3] : memref<5xf32, #tpu.memory_space<smem>>
    %132 = vector.broadcast %131 : f32 to vector<16x128xf32>
    %133 = arith.mulf %132, %130 : vector<16x128xf32>
    %134 = arith.addf %114, %133 : vector<16x128xf32>
    %135 = arith.mulf %133, %123 : vector<16x128xf32>
    %136 = arith.addf %116, %135 : vector<16x128xf32>
    %137 = arith.mulf %130, %123 : vector<16x128xf32>
    %138 = arith.addf %118, %137 : vector<16x128xf32>
    %139 = arith.subf %123, %55 : vector<16x128xf32>
    %140 = math.absf %139 : vector<16x128xf32>
    %141 = arith.addf %121, %140 : vector<16x128xf32>
    %142 = vector.extract_strided_slice %3 {offsets = [4, 0, 0], sizes = [1, 16, 128], strides = [1, 1, 1]} : vector<5x16x128xf32> to vector<1x16x128xf32>
    %143 = vector.shape_cast %142 : vector<1x16x128xf32> to vector<16x128xf32>
    %144 = arith.subf %143, %56 : vector<16x128xf32>
    %145 = math.exp %144 : vector<16x128xf32>
    %146 = arith.addf %126, %145 : vector<16x128xf32>
    %c4_i32 = arith.constant 4 : i32
    %147 = vector.broadcast %c4_i32 : i32 to vector<16x128xi32>
    %148 = arith.cmpi eq, %4, %147 : vector<16x128xi32>
    %149 = arith.extui %148 : vector<16x128xi1> to vector<16x128xi32>
    %150 = arith.sitofp %149 : vector<16x128xi32> to vector<16x128xf32>
    %c4 = arith.constant 4 : index
    %151 = memref.load %arg2[%c4] : memref<5xf32, #tpu.memory_space<smem>>
    %152 = vector.broadcast %151 : f32 to vector<16x128xf32>
    %153 = arith.mulf %152, %150 : vector<16x128xf32>
    %154 = arith.addf %134, %153 : vector<16x128xf32>
    %155 = arith.mulf %153, %143 : vector<16x128xf32>
    %156 = arith.addf %136, %155 : vector<16x128xf32>
    %157 = arith.mulf %150, %143 : vector<16x128xf32>
    %158 = arith.addf %138, %157 : vector<16x128xf32>
    %159 = arith.subf %143, %55 : vector<16x128xf32>
    %160 = math.absf %159 : vector<16x128xf32>
    %161 = arith.addf %141, %160 : vector<16x128xf32>
    %162 = math.log %146 : vector<16x128xf32>
    %163 = arith.addf %56, %162 : vector<16x128xf32>
    %164 = arith.mulf %154, %163 : vector<16x128xf32>
    %165 = arith.subf %164, %156 : vector<16x128xf32>
    %166 = arith.subf %158, %163 : vector<16x128xf32>
    %167 = math.exp %166 : vector<16x128xf32>
    %c0_25 = arith.constant 0 : index
    %c0_26 = arith.constant 0 : index
    %c0_27 = arith.constant 0 : index
    %c0_28 = arith.constant 0 : index
    %168 = vector.load %arg5[%c0_25, %c0_26, %c0_27, %c0_28] : memref<1x4x16x128xf32, #tpu.memory_space<vmem>>, vector<1x1x16x128xf32>
    %169 = vector.shape_cast %168 : vector<1x1x16x128xf32> to vector<16x128xf32>
    %170 = arith.addf %169, %165 : vector<16x128xf32>
    %c0_29 = arith.constant 0 : index
    %c0_30 = arith.constant 0 : index
    %c0_31 = arith.constant 0 : index
    %c0_32 = arith.constant 0 : index
    %171 = vector.load %arg5[%c0_29, %c0_30, %c0_31, %c0_32] : memref<1x4x16x128xf32, #tpu.memory_space<vmem>>, vector<1x1x16x128xf32>
    %172 = vector.shape_cast %171 : vector<1x1x16x128xf32> to vector<16x128xf32>
    %173 = vector.shape_cast %170 : vector<16x128xf32> to vector<1x1x16x128xf32>
    tpu.vector_store %arg5[%c0_29, %c0_30, %c0_31, %c0_32], %173 {strides = array<i32>} : memref<1x4x16x128xf32, #tpu.memory_space<vmem>>, vector<1x1x16x128xf32>,
    %c0_33 = arith.constant 0 : index
    %c1_34 = arith.constant 1 : index
    %c0_35 = arith.constant 0 : index
    %c0_36 = arith.constant 0 : index
    %174 = vector.load %arg5[%c0_33, %c1_34, %c0_35, %c0_36] : memref<1x4x16x128xf32, #tpu.memory_space<vmem>>, vector<1x1x16x128xf32>
    %175 = vector.shape_cast %174 : vector<1x1x16x128xf32> to vector<16x128xf32>
    %176 = arith.addf %175, %154 : vector<16x128xf32>
    %c0_37 = arith.constant 0 : index
    %c1_38 = arith.constant 1 : index
    %c0_39 = arith.constant 0 : index
    %c0_40 = arith.constant 0 : index
    %177 = vector.load %arg5[%c0_37, %c1_38, %c0_39, %c0_40] : memref<1x4x16x128xf32, #tpu.memory_space<vmem>>, vector<1x1x16x128xf32>
    %178 = vector.shape_cast %177 : vector<1x1x16x128xf32> to vector<16x128xf32>
    %179 = vector.shape_cast %176 : vector<16x128xf32> to vector<1x1x16x128xf32>
    tpu.vector_store %arg5[%c0_37, %c1_38, %c0_39, %c0_40], %179 {strides = array<i32>} : memref<1x4x16x128xf32, #tpu.memory_space<vmem>>, vector<1x1x16x128xf32>,
    %c0_41 = arith.constant 0 : index
    %c2_42 = arith.constant 2 : index
    %c0_43 = arith.constant 0 : index
    %c0_44 = arith.constant 0 : index
    %180 = vector.load %arg5[%c0_41, %c2_42, %c0_43, %c0_44] : memref<1x4x16x128xf32, #tpu.memory_space<vmem>>, vector<1x1x16x128xf32>
    %181 = vector.shape_cast %180 : vector<1x1x16x128xf32> to vector<16x128xf32>
    %182 = arith.addf %181, %167 : vector<16x128xf32>
    %c0_45 = arith.constant 0 : index
    %c2_46 = arith.constant 2 : index
    %c0_47 = arith.constant 0 : index
    %c0_48 = arith.constant 0 : index
    %183 = vector.load %arg5[%c0_45, %c2_46, %c0_47, %c0_48] : memref<1x4x16x128xf32, #tpu.memory_space<vmem>>, vector<1x1x16x128xf32>
    %184 = vector.shape_cast %183 : vector<1x1x16x128xf32> to vector<16x128xf32>
    %185 = vector.shape_cast %182 : vector<16x128xf32> to vector<1x1x16x128xf32>
    tpu.vector_store %arg5[%c0_45, %c2_46, %c0_47, %c0_48], %185 {strides = array<i32>} : memref<1x4x16x128xf32, #tpu.memory_space<vmem>>, vector<1x1x16x128xf32>,
    %c0_49 = arith.constant 0 : index
    %c3_50 = arith.constant 3 : index
    %c0_51 = arith.constant 0 : index
    %c0_52 = arith.constant 0 : index
    %186 = vector.load %arg5[%c0_49, %c3_50, %c0_51, %c0_52] : memref<1x4x16x128xf32, #tpu.memory_space<vmem>>, vector<1x1x16x128xf32>
    %187 = vector.shape_cast %186 : vector<1x1x16x128xf32> to vector<16x128xf32>
    %188 = arith.addf %187, %161 : vector<16x128xf32>
    %c0_53 = arith.constant 0 : index
    %c3_54 = arith.constant 3 : index
    %c0_55 = arith.constant 0 : index
    %c0_56 = arith.constant 0 : index
    %189 = vector.load %arg5[%c0_53, %c3_54, %c0_55, %c0_56] : memref<1x4x16x128xf32, #tpu.memory_space<vmem>>, vector<1x1x16x128xf32>
    %190 = vector.shape_cast %189 : vector<1x1x16x128xf32> to vector<16x128xf32>
    %191 = vector.shape_cast %188 : vector<16x128xf32> to vector<1x1x16x128xf32>
    tpu.vector_store %arg5[%c0_53, %c3_54, %c0_55, %c0_56], %191 {strides = array<i32>} : memref<1x4x16x128xf32, #tpu.memory_space<vmem>>, vector<1x1x16x128xf32>,
    return
  }
  func.func @transform_0(%arg0: i32, %arg1: i32) -> i32 {
    %c0_i32 = arith.constant 0 : i32
    %c0_i32_0 = arith.constant 0 : i32
    return %c0_i32 : i32
  }
  func.func @transform_1(%arg0: i32, %arg1: i32) -> (i32, i32, i32) {
    %c1_i32 = arith.constant 1 : i32
    %0 = arith.muli %arg0, %c1_i32 : i32
    %1 = arith.addi %0, %arg1 : i32
    %c0_i32 = arith.constant 0 : i32
    %c0_i32_0 = arith.constant 0 : i32
    %c0_i32_1 = arith.constant 0 : i32
    return %c0_i32, %c0_i32_0, %1 : i32, i32, i32
  }
  func.func @transform_2(%arg0: i32, %arg1: i32) -> (i32, i32) {
    %c1_i32 = arith.constant 1 : i32
    %0 = arith.muli %arg0, %c1_i32 : i32
    %1 = arith.addi %0, %arg1 : i32
    %c0_i32 = arith.constant 0 : i32
    %c0_i32_0 = arith.constant 0 : i32
    return %c0_i32, %1 : i32, i32
  }
  func.func @transform_3(%arg0: i32, %arg1: i32) -> (i32, i32, i32, i32) {
    %c0_i32 = arith.constant 0 : i32
    %c0_i32_0 = arith.constant 0 : i32
    %c0_i32_1 = arith.constant 0 : i32
    %c0_i32_2 = arith.constant 0 : i32
    return %arg0, %c0_i32, %c0_i32_0, %c0_i32_1 : i32, i32, i32, i32
  }
}

</mosaic_0001>

<bundles_post_ra>
// kernel: tpu_custom_call.1
= control target key start
LH: loop header
LB: loop body
LE: loop exit
PB: predicated region body
PF: predicated region fallthrough
CT: control target
= control target key end

     0   :  { %8 = vsyncpa [#allocation5], 0  ;;  %s859_s0 = inlined_call_operand.hbm [shape: f32[5], index: 0, kind: input, shape index: {}]   ;;  %s860_s1 = inlined_call_operand.hbm [shape: f32[5,16,128], index: 1, kind: input, shape index: {}]   ;;  %s861_s2 = inlined_call_operand.hbm [shape: s32[16,128], index: 2, kind: input, shape index: {}]   ;;  %s862_s3 = inlined_call_operand.hbm [shape: f32[1,4,16,128], index: 3, kind: output, shape index: {}]  }
   0x1   :  { %9 = vsyncpa [#allocation3], 0 }
   0x2   :  { %10 = vsyncpa [#allocation8], 0 }
   0x3   :  { %11 = vsyncpa [#allocation4], 0  ;;  %s495_s14 = scalar_lea.hbm %s859_s0, 16 }
   0x4   :  { %p496_p0 = scmp.ne.s32.totalorder %s859_s0, %s495_s14  ;;  %p499_p1 = scmp.lt.u32.totalorder %s495_s14, %s859_s0 }
   0x6   :  { %p501_p2 = pnand %p499_p1, %p496_p0 }
   0x8   :  { %504 = shalt.err (!%p501_p2)
}
   0x9   :  { %s579_s19 = smov [#allocation2]   ;;  %s580_s22 = smov [#allocation6]  }
   0xa   :  { %19 = dma.hbm_to_smem %s859_s0, 16, %s579_s19, [#allocation5]  }
   0xb   :  { %s28_s23 = sshll.u32 %s580_s22, 4  ;;  %s505_s26 = scalar_lea.hbm %s860_s1, 1280  ;;  %s29_s23 = int_to_ptr.vmem [resolvable:$true] %s28_s23 }
   0xc   :  { %p506_p3 = scmp.ne.s32.totalorder %s860_s1, %s505_s26  ;;  %p509_p4 = scmp.lt.u32.totalorder %s505_s26, %s860_s1 }
   0xe   :  { %p511_p5 = pnand %p509_p4, %p506_p3 }
  0x10   :  { %514 = shalt.err (!%p511_p5)
}
  0x11   :  { %s515_s4 = scalar_lea.vmem %s29_s23, 1280  ;;  %p520_p7 = scmp.lt.s32.totalorder %s29_s23, %s29_s23 }
  0x12   :  { %p516_p6 = scmp.ne.s32.totalorder %s29_s23, %s515_s4  ;;  %p521_p8 = scmp.lt.s32.totalorder %s515_s4, %s515_s4 }
  0x14   :  { %p522_p9 = por %p521_p8, %p520_p7 }
  0x16   :  { %p523_p10 = pnand %p522_p9, %p516_p6 }
  0x18   :  { %526 = shalt.err (!%p523_p10)
}
  0x19   :  { %s581_s0 = smov 128   ;;  %s582_s5 = smov 8  }
  0x1a   :  { %34 = dma.hbm_to_vmem [thread:$0]  %s860_s1, 1280, %s29_s23, [#allocation3], %s581_s0, %s581_s0, %s582_s5  }
  0x1b   :  { %s583_s8 = smov [#allocation7]   ;;  %s527_s12 = scalar_lea.hbm %s861_s2, 256 }
  0x1c   :  { %s43_s9 = sshll.u32 %s583_s8, 4  ;;  %p528_p11 = scmp.ne.s32.totalorder %s861_s2, %s527_s12  ;;  %s44_s9 = int_to_ptr.vmem [resolvable:$true] %s43_s9 }
  0x1d   :  { %p531_p12 = scmp.lt.u32.totalorder %s527_s12, %s861_s2 }
  0x1f   :  { %p533_p13 = pnand %p531_p12, %p528_p11 }
  0x21   :  { %536 = shalt.err (!%p533_p13)
}
  0x22   :  { %s537_s17 = scalar_lea.vmem %s44_s9, 256  ;;  %p542_p1 = scmp.lt.s32.totalorder %s44_s9, %s44_s9 }
  0x23   :  { %p538_p0 = scmp.ne.s32.totalorder %s44_s9, %s537_s17  ;;  %p543_p2 = scmp.lt.s32.totalorder %s537_s17, %s537_s17 }
  0x25   :  { %p544_p3 = por %p543_p2, %p542_p1 }
  0x27   :  { %p545_p4 = pnand %p544_p3, %p538_p0 }
  0x29   :  { %548 = shalt.err (!%p545_p4)
}
  0x2a   :  { %49 = dma.hbm_to_vmem [thread:$0]  %s861_s2, 256, %s44_s9, [#allocation8], %s581_s0, %s581_s0, %s582_s5  }
  0x2b   :  { %571 = dma.done.wait [#allocation5], 16  }
  0x2c   :  { %572 = vsyncadd [#allocation5], 4294967280 }
  0x2d   :  { %573 = dma.done.wait [#allocation3], 1280  }
  0x2e   :  { %574 = vsyncadd [#allocation3], 4294966016 }
  0x2f   :  { %575 = dma.done.wait [#allocation8], 256  }
  0x30   :  { %576 = vsyncadd [#allocation8], 4294967040 }
  0x31   :  { %59 = sfence }
  0x32   :  { %v650_v0 = vld [vmem:[#allocation7] sm:$0xff]  ;;  %v88_v2 = vlaneseq  ;;  %s584_s19 = smov 1   ;;  %s585_s20 = smov 127   ;;  %v655_v3 = vld [vmem:[#allocation7 + $0x8] sm:$0xff]  ;;  %v664_v9 = vld [vmem:[#allocation6] sm:$0xff]  ;;  %v586_v15 = vmov 0.0  }
  0x33   :  { %v86_v1 = vcvt.s32.f32 %v650_v0  ;;  %v87_v4 = vcvt.s32.f32 %v655_v3  ;;  %v666_v10 = vld [vmem:[#allocation6 + $0x10] sm:$0xff]  ;;  %v671_v13 = vld [vmem:[#allocation6 + $0x20] sm:$0xff]  ;;  %v673_v14 = vld [vmem:[#allocation6 + $0x8] sm:$0xff]  ;;  %s722_s2 = sld [smem:[#allocation2]]  ;;  %s726_s21 = sld [smem:[#allocation2 + $0x1]]  ;;  %vm212_vm4 = vcmp.eq.s32.totalorder %v650_v0, 0 }
  0x34   :  { %v659_v5 = vshrl.u32 %v88_v2, 7  ;;  %v681_v19 = vld [vmem:[#allocation6 + $0x30] sm:$0xff]  ;;  %v683_v20 = vld [vmem:[#allocation6 + $0x18] sm:$0xff]  ;;  %v685_v21 = vld [vmem:[#allocation6 + $0x28] sm:$0xff]  ;;  %v196_v32 = vmax.f32 %v664_v9, %v671_v13  ;;  %vm246_vm5 = vcmp.eq.s32.totalorder %v650_v0, 1  ;;  %vm280_vm6 = vcmp.eq.s32.totalorder %v650_v0, 2 }
  0x35   :  { %146 = vrot.lane.b32.xlu0 %v86_v1, %s584_s19  ;;  %154 = vrot.lane.b32.xlu1 %v86_v1, %s585_s20  ;;  %v112_v7 = vrot.slane %v86_v1, 7  ;;  %v113_v8 = vrot.slane %v87_v4, 7  ;;  %v669_v11 = vmul.f32 2.0, %v87_v4  ;;  %v123_v12 = vrot.slane %v86_v1, 1  ;;  %v693_v25 = vld [vmem:[#allocation6 + $0x38] sm:$0xff]  ;;  %v700_v28 = vld [vmem:[#allocation6 + $0x40] sm:$0xff] }
  0x36   :  { %v90_v6 = vadd.s32 8, %v659_v5  ;;  %vm114_vm1 = vcmp.lt.s32.totalorder %v659_v5, 1  ;;  %v124_v18 = vrot.slane %v87_v4, 1  ;;  %vm125_vm2 = vcmp.lt.s32.totalorder %v659_v5, 7  ;;  %v704_v31 = vld [vmem:[#allocation6 + $0x48] sm:$0xff]  ;;  %s447_s22 = sld [smem:[#allocation2 + $0x2]] }
  0x37   :  { %v115_v17 = vsel %vm114_vm1, %v112_v7, %v113_v8  ;;  %vm94_vm3 = vcmp.gt.s32.totalorder %v659_v5, 0  ;;  %v116_v23 = vsel %vm114_vm1, %v113_v8, %v112_v7  ;;  %v691_v24 = vmul.f32 2.0, %v86_v1  ;;  %s769_s23 = sld [smem:[#allocation2 + $0x3]]  ;;  %s775_s24 = sld [smem:[#allocation2 + $0x4]] }
  0x38   :  { %vm101_vm0 = vcmp.lt.s32.totalorder %v90_v6, 15  ;;  %v122_v22 = vadd.f32 %v669_v11, %v115_v17  ;;  %v127_v26 = vsel %vm125_vm2, %v124_v18, %v123_v12  ;;  %v698_v27 = vsel %vm94_vm3, 1.0, %v586_v15  ;;  %s587_s25 = smov [#allocation9]  }
  0x39   :  { %148 = vrot.lane.b32.xlu0 %v87_v4, %s584_s19  ;;  %156 = vrot.lane.b32.xlu1 %v87_v4, %s585_s20  ;;  %v676_v16 = vsel %vm101_vm0, 1.0, %v586_v15  ;;  %v117_v30 = vmul.f32 %v698_v27, %v116_v23  ;;  %v197_v33 = vmax.f32 %v666_v10, %v681_v19  ;;  %v126_v34 = vsel %vm125_vm2, %v123_v12, %v124_v18  ;;  %s422_s26 = sshll.u32 %s587_s25, 4  ;;  %s423_s26 = int_to_ptr.vmem [resolvable:$true] %s422_s26 }
  0x3a   :  { %v129_v29 = vmul.f32 %v676_v16, %v127_v26  ;;  %v200_v35 = vmax.f32 %v673_v14, %v685_v21  ;;  %v201_v36 = vmax.f32 %v683_v20, %v693_v25  ;;  %v198_v39 = vmax.f32 %v196_v32, %v700_v28  ;;  %s549_s27 = scalar_lea.vmem %s423_s26, 1024  ;;  %p554_p6 = scmp.lt.s32.totalorder %s423_s26, %s423_s26 }
  0x3b   :  { %v121_v38 = vadd.f32 %v691_v24, %v117_v30  ;;  %vm213_vm7 = vcmp.eq.s32.totalorder %v655_v3, 0  ;;  %v219_v61 = vstv %s722_s2  ;;  %vm247_vm8 = vcmp.eq.s32.totalorder %v655_v3, 1  ;;  %p550_p5 = scmp.ne.s32.totalorder %s423_s26, %s549_s27  ;;  %p555_p7 = scmp.lt.s32.totalorder %s549_s27, %s549_s27 }
  0x3c   :  { %v131_v37 = vadd.f32 %v129_v29, %v122_v22  ;;  %v202_v40 = vmax.f32 %v200_v35, %v704_v31  ;;  %v720_v42 = vmax.f32 %v198_v39, %v197_v33  ;;  %v253_v63 = vstv %s726_s21 }
  0x3d   :  { %v130_v41 = vadd.f32 %v126_v34, %v121_v38  ;;  %v440_v1 = vsel %vm212_vm4, 1.0, %v586_v15  ;;  %v442_v6 = vsel %vm246_vm5, 1.0, %v586_v15  ;;  %vm281_vm9 = vcmp.eq.s32.totalorder %v655_v3, 2  ;;  %p556_p8 = por %p555_p7, %p554_p6 }
  0x3e   :  { %134 = vrot.lane.b32.xlu1 %v131_v37, %s585_s20  ;;  %v724_v43 = vmax.f32 %v202_v40, %v201_v36  ;;  %v204_v44 = vsub.f32 %v664_v9, %v720_v42  ;;  %v238_v45 = vsub.f32 %v666_v10, %v720_v42  ;;  %v272_v46 = vsub.f32 %v671_v13, %v720_v42 }
  0x3f   :  { %132 = vrot.lane.b32.xlu0 %v130_v41, %s585_s20  ;;  %v306_v52 = vsub.f32 %v681_v19, %v720_v42  ;;  %v340_v57 = vsub.f32 %v700_v28, %v720_v42  ;;  %v220_v8 = vmul.f32 %v440_v1, %v219_v61  ;;  %v441_v12 = vsel %vm213_vm7, 1.0, %v586_v15  ;;  %p557_p9 = pnand %p556_p8, %p550_p5 }
  0x40   :  { %v205_v47 = vsub.f32 %v673_v14, %v724_v43  ;;  %v239_v48 = vsub.f32 %v683_v20, %v724_v43  ;;  %v273_v49 = vsub.f32 %v685_v21, %v724_v43  ;;  %v206_v50 = vmul.f32 1.442695, %v204_v44 }
  0x41   :  { %v240_v51 = vmul.f32 1.442695, %v238_v45  ;;  %v307_v55 = vsub.f32 %v693_v25, %v724_v43  ;;  %v274_v56 = vmul.f32 1.442695, %v272_v46  ;;  %v341_v59 = vsub.f32 %v704_v31, %v724_v43 }
  0x42   :  { %140 = vrot.lane.b32.xlu1 %v131_v37, %s584_s19  ;;  %v208_v53 = vmul.f32 1.442695, %v205_v47  ;;  %v242_v54 = vmul.f32 1.442695, %v239_v48  ;;  %463 = vpow2.f32 %v206_v50  ;;  %v276_v58 = vmul.f32 1.442695, %v273_v49 }
  0x43   :  { %138 = vrot.lane.b32.xlu0 %v130_v41, %s584_s19  ;;  %v308_v60 = vmul.f32 1.442695, %v306_v52  ;;  %v310_v62 = vmul.f32 1.442695, %v307_v55  ;;  %v342_v4 = vmul.f32 1.442695, %v340_v57  ;;  %v254_v18 = vmul.f32 %v442_v6, %v253_v63 }
  0x44   :  { %465 = vpow2.f32 %v208_v53  ;;  %v344_v7 = vmul.f32 1.442695, %v341_v59  ;;  %v443_v17 = vsel %vm247_vm8, 1.0, %v586_v15  ;;  %v221_v22 = vmul.f32 %v441_v12, %v219_v61 }
  0x45   :  { %467 = vpow2.f32 %v240_v51  ;;  %v255_v23 = vmul.f32 %v443_v17, %v253_v63  ;;  %vm314_vm10 = vcmp.eq.s32.totalorder %v650_v0, 3  ;;  %v445_v26 = vsel %vm280_vm6, 1.0, %v586_v15 }
  0x46   :  { %469 = vpow2.f32 %v242_v54  ;;  %vm315_vm11 = vcmp.eq.s32.totalorder %v655_v3, 3  ;;  %v446_v30 = vsel %vm281_vm9, 1.0, %v586_v15  ;;  %v287_v32 = vstv %s447_s22 }
  0x47   :  { %471 = vpow2.f32 %v274_v56  ;;  %vm348_vm12 = vcmp.eq.s32.totalorder %v650_v0, 4  ;;  %v256_v34 = vadd.f32 %v254_v18, %v220_v8  ;;  %v257_v35 = vadd.f32 %v255_v23, %v221_v22 }
  0x48   :  { %473 = vpow2.f32 %v276_v58  ;;  %v288_v36 = vmul.f32 %v445_v26, %v287_v32  ;;  %v289_v37 = vmul.f32 %v446_v30, %v287_v32  ;;  %v228_v39 = vmul.f32 %v440_v1, %v664_v9 }
  0x49   :  { %475 = vpow2.f32 %v308_v60  ;;  %v262_v40 = vmul.f32 %v442_v6, %v666_v10  ;;  %v321_v41 = vstv %s769_s23  ;;  %v448_v47 = vsel %vm314_vm10, 1.0, %v586_v15 }
  0x4a   :  { %477 = vpow2.f32 %v310_v62  ;;  %v290_v46 = vadd.f32 %v288_v36, %v256_v34  ;;  %v449_v48 = vsel %vm315_vm11, 1.0, %v586_v15  ;;  %v291_v51 = vadd.f32 %v289_v37, %v257_v35 }
  0x4b   :  { %479 = vpow2.f32 %v342_v4  ;;  %vm349_vm13 = vcmp.eq.s32.totalorder %v655_v3, 4  ;;  %v451_v52 = vsel %vm348_vm12, 1.0, %v586_v15  ;;  %v322_v55 = vmul.f32 %v448_v47, %v321_v41 }
  0x4c   :  { %481 = vpow2.f32 %v344_v7  ;;  %v464_v29 = vpop.eup %463  ;;  %v323_v56 = vmul.f32 %v449_v48, %v321_v41  ;;  %v355_v57 = vstv %s775_s24  ;;  %v229_v59 = vmul.f32 %v441_v12, %v673_v14 }
  0x4d   :  { %v263_v60 = vmul.f32 %v443_v17, %v683_v20  ;;  %v356_v62 = vmul.f32 %v451_v52, %v355_v57  ;;  %v324_v4 = vadd.f32 %v322_v55, %v290_v46  ;;  %v452_v0 = vsel %vm349_vm13, 1.0, %v586_v15 }
  0x4e   :  { %v466_v33 = vpop.eup %465  ;;  %v325_v6 = vadd.f32 %v323_v56, %v291_v51  ;;  %v258_v32 = vmul.f32 %v254_v18, %v666_v10  ;;  %v357_v34 = vmul.f32 %v452_v0, %v355_v57  ;;  %v225_v17 = vmul.f32 %v221_v22, %v673_v14 }
  0x4f   :  { %v468_v38 = vpop.eup %467  ;;  %v259_v35 = vmul.f32 %v255_v23, %v683_v20  ;;  %v358_v41 = vadd.f32 %v356_v62, %v324_v4  ;;  %v292_v18 = vmul.f32 %v288_v36, %v671_v13  ;;  %v293_v22 = vmul.f32 %v289_v37, %v685_v21 }
  0x50   :  { %v470_v44 = vpop.eup %469  ;;  %v244_v45 = vadd.f32 %v468_v38, %v464_v29  ;;  %v224_v29 = vmul.f32 %v220_v8, %v664_v9  ;;  %v359_v3 = vadd.f32 %v357_v34, %v325_v6  ;;  %v327_v57 = vmul.f32 %v323_v56, %v693_v25 }
  0x51   :  { %v472_v49 = vpop.eup %471  ;;  %v245_v50 = vadd.f32 %v470_v44, %v466_v33  ;;  %v264_v44 = vadd.f32 %v262_v40, %v228_v39  ;;  %v261_v51 = vadd.f32 %v259_v35, %v225_v17  ;;  %401 = vst [vmem:[#allocation9 + $0x10] sm:$0xff] %v358_v41  ;;  %v364_v36 = vmul.f32 %v451_v52, %v700_v28 }
  0x52   :  { %v474_v53 = vpop.eup %473  ;;  %v278_v54 = vadd.f32 %v472_v49, %v244_v45  ;;  %v296_v45 = vmul.f32 %v445_v26, %v671_v13  ;;  %v265_v49 = vadd.f32 %v263_v60, %v229_v59  ;;  %v260_v8 = vadd.f32 %v258_v32, %v224_v29  ;;  %402 = vst [vmem:[#allocation9 + $0x18] sm:$0xff] %v359_v3 }
  0x53   :  { %v476_v58 = vpop.eup %475  ;;  %v279_v61 = vadd.f32 %v474_v53, %v245_v50  ;;  %v297_v50 = vmul.f32 %v446_v30, %v685_v21  ;;  %v330_v53 = vmul.f32 %v448_v47, %v681_v19  ;;  %v331_v26 = vmul.f32 %v449_v48, %v693_v25 }
  0x54   :  { %v478_v63 = vpop.eup %477  ;;  %v312_v1 = vadd.f32 %v476_v58, %v278_v54  ;;  %v298_v23 = vadd.f32 %v296_v45, %v264_v44  ;;  %v294_v40 = vadd.f32 %v292_v18, %v260_v8  ;;  %v326_v54 = vmul.f32 %v322_v55, %v681_v19 }
  0x55   :  { %v480_v7 = vpop.eup %479  ;;  %v313_v33 = vadd.f32 %v478_v63, %v279_v61  ;;  %v299_v39 = vadd.f32 %v297_v50, %v265_v49  ;;  %v295_v30 = vadd.f32 %v293_v22, %v261_v51  ;;  %v365_v37 = vmul.f32 %v452_v0, %v704_v31 }
  0x56   :  { %v482_v12 = vpop.eup %481  ;;  %v346_v38 = vadd.f32 %v480_v7, %v312_v1  ;;  %v332_v58 = vadd.f32 %v330_v53, %v298_v23  ;;  %v328_v60 = vadd.f32 %v326_v54, %v294_v40  ;;  %v360_v61 = vmul.f32 %v356_v62, %v700_v28 }
  0x57   :  { %v347_v46 = vadd.f32 %v482_v12, %v313_v33  ;;  %v333_v59 = vadd.f32 %v331_v26, %v299_v39  ;;  %v329_v63 = vadd.f32 %v327_v57, %v295_v30  ;;  %v361_v1 = vmul.f32 %v357_v34, %v704_v31 }
  0x58   :  { %483 = vlog2.f32 %v346_v38  ;;  %v366_v4 = vadd.f32 %v364_v36, %v332_v58  ;;  %v362_v29 = vadd.f32 %v360_v61, %v328_v60 }
  0x59   :  { %485 = vlog2.f32 %v347_v46  ;;  %v367_v55 = vadd.f32 %v365_v37, %v333_v59  ;;  %v363_v32 = vadd.f32 %v361_v1, %v329_v63 }
  0x62   :  { %v484_v47 = vpop.eup %483 }
  0x63   :  { %v486_v48 = vpop.eup %485  ;;  %v375_v6 = vmul.f32 0.6931472, %v484_v47 }
  0x64   :  { %v377_v7 = vmul.f32 0.6931472, %v486_v48 }
  0x65   :  { %v378_v56 = vadd.f32 %v375_v6, %v720_v42  ;;  %v92_v42 = vand.u32 127, %v88_v2 }
  0x66   :  { %v379_v52 = vadd.f32 %v377_v7, %v724_v43 }
  0x67   :  { %v380_v33 = vmul.f32 %v378_v56, %v358_v41  ;;  %v384_v0 = vsub.f32 %v366_v4, %v378_v56  ;;  %v93_v46 = vand.u32 15, %v92_v42 }
  0x68   :  { %v381_v12 = vmul.f32 %v379_v52, %v359_v3  ;;  %v385_v17 = vsub.f32 %v367_v55, %v379_v52 }
  0x69   :  { %v382_v62 = vsub.f32 %v380_v33, %v362_v29  ;;  %v386_v35 = vmul.f32 1.442695, %v384_v0  ;;  %vm106_vm14 = vcmp.gt.s32.totalorder %v93_v46, 0  ;;  %vm109_vm15 = vcmp.lt.s32.totalorder %v93_v46, 15 }
  0x6a   :  { %v383_v38 = vsub.f32 %v381_v12, %v363_v32  ;;  %v388_v44 = vmul.f32 1.442695, %v385_v17  ;;  %v438_v43 = vsel %vm106_vm14, 1.0, %v586_v15  ;;  %v439_v49 = vsel %vm109_vm15, 1.0, %v586_v15 }
  0x6b   :  { %487 = vpow2.f32 %v386_v35  ;;  %394 = vst [vmem:[#allocation9] sm:$0xff] %v382_v62 }
  0x6c   :  { %489 = vpow2.f32 %v388_v44  ;;  %395 = vst [vmem:[#allocation9 + $0x8] sm:$0xff] %v383_v38 }
  0x75   :  { %v488_v34 = vpop.eup %487 }
  0x76   :  { %v490_v45 = vpop.eup %489  ;;  %408 = vst [vmem:[#allocation9 + $0x20] sm:$0xff] %v488_v34 }
  0x77   :  { %409 = vst [vmem:[#allocation9 + $0x28] sm:$0xff] %v490_v45 }
  0xa7   :  { %v147_v41 = vpop.permute.xlu0 %146  ;;  %v155_v3 = vpop.permute.xlu1 %154 }
  0xa8   :  { %v150_v50 = vmul.f32 %v438_v43, %v147_v41  ;;  %v158_v18 = vmul.f32 %v439_v49, %v155_v3 }
  0xaa   :  { %v152_v8 = vadd.f32 %v150_v50, %v691_v24 }
  0xab   :  { %v149_v51 = vpop.permute.xlu0 %148  ;;  %v157_v22 = vpop.permute.xlu1 %156 }
  0xac   :  { %v151_v23 = vmul.f32 %v438_v43, %v149_v51  ;;  %v159_v53 = vmul.f32 %v439_v49, %v157_v22  ;;  %v160_v39 = vadd.f32 %v158_v18, %v152_v8 }
  0xae   :  { %v153_v2 = vadd.f32 %v151_v23, %v669_v11  ;;  %v162_v40 = vrot.slane %v160_v39, 1  ;;  %v168_v57 = vrot.slane %v160_v39, 7 }
  0xb0   :  { %v161_v26 = vadd.f32 %v159_v53, %v153_v2  ;;  %v135_v36 = vpop.permute.xlu1 %134 }
  0xb1   :  { %v133_v59 = vpop.permute.xlu0 %132  ;;  %v137_v47 = vmul.f32 %v439_v49, %v135_v36 }
  0xb2   :  { %v163_v54 = vrot.slane %v161_v26, 1  ;;  %v169_v30 = vrot.slane %v161_v26, 7  ;;  %v136_v6 = vmul.f32 %v439_v49, %v133_v59 }
  0xb4   :  { %v165_v58 = vsel %vm125_vm2, %v163_v54, %v162_v40  ;;  %v171_v15 = vsel %vm114_vm1, %v169_v30, %v168_v57  ;;  %v170_v37 = vsel %vm114_vm1, %v168_v57, %v169_v30  ;;  %v141_v61 = vpop.permute.xlu1 %140  ;;  %v164_v1 = vsel %vm125_vm2, %v162_v40, %v163_v54 }
  0xb5   :  { %v167_v24 = vmul.f32 %v676_v16, %v165_v58  ;;  %v172_v11 = vmul.f32 %v698_v27, %v171_v15  ;;  %v143_v63 = vmul.f32 %v438_v43, %v141_v61  ;;  %v139_v4 = vpop.permute.xlu0 %138 }
  0xb6   :  { %v142_v16 = vmul.f32 %v438_v43, %v139_v4 }
  0xb7   :  { %v175_v60 = vsub.f32 %v167_v24, %v170_v37  ;;  %v174_v48 = vsub.f32 %v164_v1, %v172_v11  ;;  %v145_v7 = vsub.f32 %v137_v47, %v143_v63 }
  0xb8   :  { %v144_v56 = vsub.f32 %v136_v6, %v142_v16 }
  0xb9   :  { %v179_v55 = vmul.f32 %v175_v60, %v175_v60  ;;  %v177_v29 = vmul.f32 %v145_v7, %v145_v7  ;;  %v178_v32 = vmul.f32 %v174_v48, %v174_v48 }
  0xba   :  { %v176_v33 = vmul.f32 %v144_v56, %v144_v56 }
  0xbb   :  { %v181_v52 = vadd.f32 %v179_v55, %v177_v29 }
  0xbc   :  { %v180_v27 = vadd.f32 %v178_v32, %v176_v33 }
  0xbd   :  { %491 = vrsqrt.f32 %v181_v52  ;;  %vm191_vm0 = vcmp.eq.f32.partialorder %v181_v52, inf  ;;  %v194_v17 = vand.u32 2147483648, %v181_v52  ;;  %vm193_vm1 = vcmp.eq.f32.partialorder %v181_v52, 0.0 }
  0xbe   :  { %493 = vrsqrt.f32 %v180_v27  ;;  %vm184_vm2 = vcmp.eq.f32.partialorder %v180_v27, inf  ;;  %v187_v45 = vand.u32 2147483648, %v180_v27  ;;  %vm186_vm3 = vcmp.eq.f32.partialorder %v180_v27, 0.0 }
  0xc7   :  { %v492_v0 = vpop.eup %491 }
  0xc8   :  { %v190_v12 = vmul.f32 %v492_v0, %v181_v52  ;;  %v494_v5 = vpop.eup %493 }
  0xc9   :  { %v183_v38 = vmul.f32 %v494_v5, %v180_v27 }
  0xca   :  { %v192_v62 = vsel %vm191_vm0, %v181_v52, %v190_v12 }
  0xcb   :  { %v195_v35 = vsel %vm193_vm1, %v194_v17, %v192_v62  ;;  %v185_v46 = vsel %vm184_vm2, %v180_v27, %v183_v38 }
  0xcc   :  { %v233_v44 = vsub.f32 %v673_v14, %v195_v35  ;;  %v267_v34 = vsub.f32 %v683_v20, %v195_v35  ;;  %v301_v42 = vsub.f32 %v685_v21, %v195_v35  ;;  %v188_v3 = vsel %vm186_vm3, %v187_v45, %v185_v46 }
  0xcd   :  { %v335_v49 = vsub.f32 %v693_v25, %v195_v35  ;;  %v232_v50 = vsub.f32 %v664_v9, %v188_v3  ;;  %v266_v8 = vsub.f32 %v666_v10, %v188_v3  ;;  %v300_v18 = vsub.f32 %v671_v13, %v188_v3 }
  0xce   :  { %v235_v43 = vand.u32 2147483647, %v233_v44  ;;  %v269_v41 = vand.u32 2147483647, %v267_v34  ;;  %v303_v14 = vand.u32 2147483647, %v301_v42  ;;  %v369_v20 = vsub.f32 %v704_v31, %v195_v35 }
  0xcf   :  { %v234_v22 = vand.u32 2147483647, %v232_v50  ;;  %v268_v23 = vand.u32 2147483647, %v266_v8  ;;  %v334_v21 = vsub.f32 %v681_v19, %v188_v3  ;;  %v337_v39 = vand.u32 2147483647, %v335_v49 }
  0xd0   :  { %v271_v51 = vadd.f32 %v269_v41, %v235_v43  ;;  %v302_v26 = vand.u32 2147483647, %v300_v18  ;;  %v368_v25 = vsub.f32 %v700_v28, %v188_v3  ;;  %v371_v9 = vand.u32 2147483647, %v369_v20 }
  0xd1   :  { %v270_v2 = vadd.f32 %v268_v23, %v234_v22  ;;  %v336_v10 = vand.u32 2147483647, %v334_v21 }
  0xd2   :  { %v305_v53 = vadd.f32 %v303_v14, %v271_v51  ;;  %v370_v57 = vand.u32 2147483647, %v368_v25 }
  0xd3   :  { %v304_v54 = vadd.f32 %v302_v26, %v270_v2 }
  0xd4   :  { %v339_v40 = vadd.f32 %v337_v39, %v305_v53 }
  0xd5   :  { %v338_v13 = vadd.f32 %v336_v10, %v304_v54 }
  0xd6   :  { %v373_v30 = vadd.f32 %v371_v9, %v339_v40 }
  0xd7   :  { %v372_v31 = vadd.f32 %v370_v57, %v338_v13 }
  0xd8   :  { %416 = vst [vmem:[#allocation9 + $0x38] sm:$0xff] %v373_v30 }
  0xd9   :  { %415 = vst [vmem:[#allocation9 + $0x30] sm:$0xff] %v372_v31 }
  0xda   :  { %560 = shalt.err (!%p557_p9)
}
  0xdb   :  { %s561_s30 = scalar_lea.hbm %s862_s3, 1024 }
  0xdc   :  { %p562_p10 = scmp.ne.s32.totalorder %s862_s3, %s561_s30  ;;  %p565_p11 = scmp.lt.u32.totalorder %s561_s30, %s862_s3 }
  0xde   :  { %p567_p12 = pnand %p565_p11, %p562_p10 }
  0xe0   :  { %570 = shalt.err (!%p567_p12)
}
  0xe1   :  { %428 = dma.vmem_to_hbm [thread:$0]  %s423_s26, 1024, %s862_s3, [#allocation4], %s581_s0, %s581_s0, %s582_s5  }
  0xe2   :  { %577 = dma.done.wait [#allocation4], 1024  }
  0xe3   :  { %578 = vsyncadd [#allocation4], 4294966272 }
  0xe4   :  { %432 = vsyncpa [#allocation3], 1 }
  0xe5   :  { %433 = vsyncpa [#allocation8], 1 }
  0xe6   :  { %434 = vsyncpa [#allocation4], 1 }
  0xe7   :  { %435 = vsyncpa [#allocation5], 1 }

</bundles_post_ra>
